<compile_context>
chip_gen: v6e
topology: v6e:2x2x1
jax: 0.10.0
libtpu: 0.0.40
codegen_flags: <defaults>
</compile_context>

<pallas_src>
import jax
import jax.numpy as jnp
from jax.experimental import pallas as pl
from jax.experimental.pallas import tpu as pltpu


def _attention_kernel(ctx_ref, w1t_ref, b1_ref, wv_ref, bv_ref,
                      wc_ref, attn_ref):
    """One grid step == one tile of TB batch elements.

    ctx_ref  : (TB, S, D) VMEM   context tile
    w1t_ref  : (D, D)     VMEM   self.linear.weight.T   (resident across steps)
    b1_ref   : (1, D)     VMEM   self.linear.bias
    wv_ref   : (1, D)     VMEM   self.linear_V.weight   (row vector)
    bv_ref   : (1,)       SMEM   self.linear_V.bias     (scalar)
    wc_ref   : (TB, D)    VMEM out  weightedContext tile
    attn_ref : (TB, S)    VMEM out  attention weights tile
    """
    TB, S, D = ctx_ref.shape

    # One big MXU matmul over all TB*S rows of this tile (merge leading dims).
    ctx = ctx_ref[...].reshape(TB * S, D)                     # (TB*S, D)
    h = jnp.tanh(
        jnp.dot(ctx, w1t_ref[...], preferred_element_type=jnp.float32)
        + b1_ref[...]
    )                                                         # (TB*S, D)

    # l_ctxt_2 = tanh(l_ctxt): double tanh, faithful to the original module
    # (self.linear_ctx output is dead and therefore not computed).
    h2 = jnp.tanh(h)                                          # (TB*S, D)

    h3 = h.reshape(TB, S, D)
    h2_3 = h2.reshape(TB, S, D)

    # attn logits = Linear_V(l_ctxt): broadcast-multiply + lane (D) reduction
    # instead of an N=1 MXU matmul; result stays in (TB, S) layout.
    logits = jnp.sum(h3 * wv_ref[...], axis=-1) + bv_ref[0]   # (TB, S)

    # Softmax over the sourceL axis S (last / lane axis).
    m = jnp.max(logits, axis=-1, keepdims=True)               # (TB, 1)
    e = jnp.exp(logits - m)                                    # (TB, S)
    denom = jnp.sum(e, axis=-1, keepdims=True)                 # (TB, 1)
    attn = e * pl.reciprocal(denom, approx=False)              # (TB, S)

    # weightedContext[t] = sum_s attn[t, s] * l_ctxt_2[t, s, :]
    # Single hoisted broadcast + elementwise mul + sublane-sum.
    wc = jnp.sum(attn[:, :, None] * h2_3, axis=1)              # (TB, D)

    wc_ref[...] = wc.astype(wc_ref.dtype)
    attn_ref[...] = attn.astype(attn_ref.dtype)


def _choose_batch_tile(B, S):
    """Pick TB so TB*S ~ 256 rows (fills the MXU M dimension), sublane-aligned."""
    target_rows = 256
    tb = max(1, target_rows // max(S, 1))
    if tb >= B:
        return B                       # whole batch in one grid step
    return max(8, (tb // 8) * 8)       # multiple of 8 when tiling the batch


def attention_simple_lin(context, w1, b1, w_ctx, b_ctx, wv, bv):
    """Wrapper. context: (B, S, D) f32.

    w1, w_ctx : (D, D) PyTorch-convention Linear weights (out, in)
    b1, b_ctx : (D,)
    wv        : (1, D), bv: (1,)
    w_ctx / b_ctx are accepted for interface parity but unused (dead in the
    original forward).
    """
    del w_ctx, b_ctx  # dead parameters in the reference forward pass
    context = jnp.asarray(context, jnp.float32)
    B, S, D = context.shape

    tb = _choose_batch_tile(B, S)
    b_pad = pl.cdiv(B, tb) * tb
    if b_pad != B:
        # Zero-pad the batch to a multiple of the tile; padded rows produce
        # finite garbage (softmax of constant logits) and are sliced away.
        context = jnp.pad(context, ((0, b_pad - B), (0, 0), (0, 0)))

    w1t = jnp.asarray(w1, jnp.float32).T                      # (D, D)
    b1r = jnp.asarray(b1, jnp.float32).reshape(1, D)           # (1, D)
    wvr = jnp.asarray(wv, jnp.float32).reshape(1, D)           # (1, D)
    bvr = jnp.asarray(bv, jnp.float32).reshape(1)              # (1,) scalar

    grid = (b_pad // tb,)
    grid_spec = pltpu.PrefetchScalarGridSpec(
        num_scalar_prefetch=0,
        grid=grid,
        in_specs=[
            pl.BlockSpec((tb, S, D), lambda i: (i, 0, 0)),     # context tile
            pl.BlockSpec((D, D), lambda i: (0, 0)),            # W1^T (resident)
            pl.BlockSpec((1, D), lambda i: (0, 0)),            # b1   (resident)
            pl.BlockSpec((1, D), lambda i: (0, 0)),            # wV row (resident)
            pl.BlockSpec(memory_space=pltpu.MemorySpace.SMEM), # bV scalar
        ],
        out_specs=[
            pl.BlockSpec((tb, D), lambda i: (i, 0)),           # weightedContext
            pl.BlockSpec((tb, S), lambda i: (i, 0)),           # attn
        ],
    )

    wc, attn = pl.pallas_call(
        _attention_kernel,
        out_shape=(
            jax.ShapeDtypeStruct((b_pad, D), jnp.float32),
            jax.ShapeDtypeStruct((b_pad, S), jnp.float32),
        ),
        grid_spec=grid_spec,
        compiler_params=pltpu.CompilerParams(
            dimension_semantics=("parallel",)
        ),
    )(context, w1t, b1r, wvr, bvr)

    return wc[:B], attn[:B]


def _reference(context, w1, b1, wv, bv):
    """Pure-JAX reference mirroring the PyTorch forward exactly."""
    B, S, D = context.shape
    x = context.reshape(-1, D)
    l_ctxt = jnp.tanh(x @ w1.T + b1)                  # (B*S, D)
    l_ctxt_2 = jnp.tanh(l_ctxt)                       # double tanh (bug preserved)
    l_ctxt_2 = l_ctxt_2.reshape(B, S, D)
    attn = (l_ctxt @ wv.T + bv).reshape(B, S)
    attn = jax.nn.softmax(attn, axis=1)
    wc = jnp.einsum("bs,bsd->bd", attn, l_ctxt_2)
    return wc, attn


def _make_params(key, D):
    k_w1, k_b1, k_wc, k_bc, k_wv, k_bv = jax.random.split(key, 6)
    bound = 1.0 / (D ** 0.5)
    w1 = jax.random.uniform(k_w1, (D, D), jnp.float32, -bound, bound)
    b1 = jax.random.uniform(k_b1, (D,), jnp.float32, -bound, bound)
    w_ctx = jax.random.uniform(k_wc, (D, D), jnp.float32, -bound, bound)  # dead
    b_ctx = jax.random.uniform(k_bc, (D,), jnp.float32, -bound, bound)    # dead
    wv = jax.random.uniform(k_wv, (1, D), jnp.float32, -bound, bound)
    bv = jax.random.uniform(k_bv, (1,), jnp.float32, -bound, bound)
    return w1, b1, w_ctx, b_ctx, wv, bv


if __name__ == "__main__":
    key = jax.random.PRNGKey(0)
    k_params, k_ctx1, k_ctx2 = jax.random.split(key, 3)

    D = 32
    w1, b1, w_ctx, b_ctx, wv, bv = _make_params(k_params, D)

    # Primary small shape (matches the module's batch x sourceL x dim convention).
    B1, S1 = 2, 8
    context1 = jax.random.normal(k_ctx1, (B1, S1, D), jnp.float32)
    wc1, attn1 = attention_simple_lin(context1, w1, b1, w_ctx, b_ctx, wv, bv)
    jax.block_until_ready((wc1, attn1))
    wc1_ref, attn1_ref = _reference(context1, w1, b1, wv, bv)
    assert jnp.allclose(wc1, wc1_ref, atol=1e-5, rtol=1e-5), "weightedContext mismatch (B=2)"
    assert jnp.allclose(attn1, attn1_ref, atol=1e-5, rtol=1e-5), "attn mismatch (B=2)"

    # Second shape exercises the multi-tile + batch-padding path (TB=32, grid=2).
    B2, S2 = 40, 8
    context2 = jax.random.normal(k_ctx2, (B2, S2, D), jnp.float32)
    wc2, attn2 = attention_simple_lin(context2, w1, b1, w_ctx, b_ctx, wv, bv)
    jax.block_until_ready((wc2, attn2))
    wc2_ref, attn2_ref = _reference(context2, w1, b1, wv, bv)
    assert jnp.allclose(wc2, wc2_ref, atol=1e-5, rtol=1e-5), "weightedContext mismatch (B=40)"
    assert jnp.allclose(attn2, attn2_ref, atol=1e-5, rtol=1e-5), "attn mismatch (B=40)"

    print("KERNEL_OK")
</pallas_src>

<mosaic_0001>
module attributes {stable_mosaic.version = 11 : i64} {
  func.func @_attention_kernel(%arg0: i32, %arg1: memref<2x8x32xf32, #tpu.memory_space<vmem>>, %arg2: memref<32x32xf32, #tpu.memory_space<vmem>>, %arg3: memref<1x32xf32, #tpu.memory_space<vmem>>, %arg4: memref<1x32xf32, #tpu.memory_space<vmem>>, %arg5: memref<1xf32, #tpu.memory_space<smem>>, %arg6: memref<2x32xf32, #tpu.memory_space<vmem>>, %arg7: memref<2x8xf32, #tpu.memory_space<vmem>>) attributes {dimension_semantics = [#tpu.dimension_semantics<parallel>], iteration_bounds = array<i64: 1>, scalar_prefetch = 0 : i64, scratch_operands = 0 : i64, tpu.core_type = #tpu.core_type<tc>, window_params = [{transform_indices = @transform_0, window_bounds = array<i64: 2, 8, 32>}, {pipeline_mode = #tpu.pipeline_mode<synchronous>, transform_indices = @transform_1, window_bounds = array<i64: 32, 32>}, {pipeline_mode = #tpu.pipeline_mode<synchronous>, transform_indices = @transform_2, window_bounds = array<i64: 1, 32>}, {pipeline_mode = #tpu.pipeline_mode<synchronous>, transform_indices = @transform_3, window_bounds = array<i64: 1, 32>}, {transform_indices = @transform_4, window_bounds = array<i64: 1>}, {transform_indices = @transform_5, window_bounds = array<i64: 2, 32>}, {transform_indices = @transform_6, window_bounds = array<i64: 2, 8>}]} {
    %c0 = arith.constant 0 : index
    %c0_0 = arith.constant 0 : index
    %c0_1 = arith.constant 0 : index
    %0 = vector.load %arg1[%c0, %c0_0, %c0_1] : memref<2x8x32xf32, #tpu.memory_space<vmem>>, vector<2x8x32xf32>
    %1 = vector.shape_cast %0 : vector<2x8x32xf32> to vector<16x32xf32>
    %c0_2 = arith.constant 0 : index
    %c0_3 = arith.constant 0 : index
    %2 = vector.load %arg2[%c0_2, %c0_3] : memref<32x32xf32, #tpu.memory_space<vmem>>, vector<32x32xf32>
    %cst = arith.constant dense<0.000000e+00> : vector<16x32xf32>
    %3 = tpu.matmul %1, %2, %cst {dimension_numbers = #tpu.dot_dimension_numbers<[1], [0], [0], [1], [0, 0, 1, 1], [], []>} : vector<16x32xf32>, vector<32x32xf32>, vector<16x32xf32> -> vector<16x32xf32>
    %c0_4 = arith.constant 0 : index
    %c0_5 = arith.constant 0 : index
    %4 = vector.load %arg3[%c0_4, %c0_5] : memref<1x32xf32, #tpu.memory_space<vmem>>, vector<1x32xf32>
    %5 = vector.broadcast %4 : vector<1x32xf32> to vector<16x32xf32>
    %6 = arith.addf %3, %5 : vector<16x32xf32>
    %7 = math.tanh %6 : vector<16x32xf32>
    %8 = math.tanh %7 : vector<16x32xf32>
    %9 = vector.shape_cast %7 : vector<16x32xf32> to vector<2x8x32xf32>
    %10 = vector.shape_cast %8 : vector<16x32xf32> to vector<2x8x32xf32>
    %c0_6 = arith.constant 0 : index
    %c0_7 = arith.constant 0 : index
    %11 = vector.load %arg4[%c0_6, %c0_7] : memref<1x32xf32, #tpu.memory_space<vmem>>, vector<1x32xf32>
    %12 = vector.shape_cast %11 : vector<1x32xf32> to vector<1x1x32xf32>
    %13 = vector.broadcast %12 : vector<1x1x32xf32> to vector<2x8x32xf32>
    %14 = arith.mulf %9, %13 : vector<2x8x32xf32>
    %cst_8 = arith.constant dense<0.000000e+00> : vector<2x8xf32>
    %15 = vector.multi_reduction <add>, %14, %cst_8 [2] : vector<2x8x32xf32> to vector<2x8xf32>
    %c0_9 = arith.constant 0 : index
    %16 = memref.load %arg5[%c0_9] : memref<1xf32, #tpu.memory_space<smem>>
    %17 = vector.broadcast %16 : f32 to vector<2x8xf32>
    %18 = arith.addf %15, %17 : vector<2x8xf32>
    %cst_10 = arith.constant dense<0xFF800000> : vector<2xf32>
    %19 = vector.multi_reduction <maximumf>, %18, %cst_10 [1] : vector<2x8xf32> to vector<2xf32>
    %20 = vector.shape_cast %19 : vector<2xf32> to vector<2x1xf32>
    %21 = vector.broadcast %20 : vector<2x1xf32> to vector<2x8xf32>
    %22 = arith.subf %18, %21 : vector<2x8xf32>
    %23 = math.exp %22 : vector<2x8xf32>
    %cst_11 = arith.constant dense<0.000000e+00> : vector<2xf32>
    %24 = vector.multi_reduction <add>, %23, %cst_11 [1] : vector<2x8xf32> to vector<2xf32>
    %25 = vector.shape_cast %24 : vector<2xf32> to vector<2x1xf32>
    %26 = tpu.reciprocal %25 : vector<2x1xf32> -> vector<2x1xf32>
    %27 = vector.broadcast %26 : vector<2x1xf32> to vector<2x8xf32>
    %28 = arith.mulf %23, %27 : vector<2x8xf32>
    %29 = vector.shape_cast %28 : vector<2x8xf32> to vector<2x8x1xf32>
    %30 = vector.broadcast %29 : vector<2x8x1xf32> to vector<2x8x32xf32>
    %31 = arith.mulf %30, %10 : vector<2x8x32xf32>
    %cst_12 = arith.constant dense<0.000000e+00> : vector<2x32xf32>
    %32 = vector.multi_reduction <add>, %31, %cst_12 [1] : vector<2x8x32xf32> to vector<2x32xf32>
    %c0_13 = arith.constant 0 : index
    %c0_14 = arith.constant 0 : index
    %33 = vector.load %arg6[%c0_13, %c0_14] : memref<2x32xf32, #tpu.memory_space<vmem>>, vector<2x32xf32>
    tpu.vector_store %arg6[%c0_13, %c0_14], %32 {strides = array<i32>} : memref<2x32xf32, #tpu.memory_space<vmem>>, vector<2x32xf32>,
    %c0_15 = arith.constant 0 : index
    %c0_16 = arith.constant 0 : index
    %34 = vector.load %arg7[%c0_15, %c0_16] : memref<2x8xf32, #tpu.memory_space<vmem>>, vector<2x8xf32>
    tpu.vector_store %arg7[%c0_15, %c0_16], %28 {strides = array<i32>} : memref<2x8xf32, #tpu.memory_space<vmem>>, vector<2x8xf32>,
    return
  }
  func.func @transform_0(%arg0: i32) -> (i32, i32, i32) {
    %c0_i32 = arith.constant 0 : i32
    %c0_i32_0 = arith.constant 0 : i32
    %c0_i32_1 = arith.constant 0 : i32
    return %arg0, %c0_i32, %c0_i32_0 : i32, i32, i32
  }
  func.func @transform_1(%arg0: i32) -> (i32, i32) {
    %c0_i32 = arith.constant 0 : i32
    %c0_i32_0 = arith.constant 0 : i32
    %c0_i32_1 = arith.constant 0 : i32
    return %c0_i32, %c0_i32_0 : i32, i32
  }
  func.func @transform_2(%arg0: i32) -> (i32, i32) {
    %c0_i32 = arith.constant 0 : i32
    %c0_i32_0 = arith.constant 0 : i32
    %c0_i32_1 = arith.constant 0 : i32
    return %c0_i32, %c0_i32_0 : i32, i32
  }
  func.func @transform_3(%arg0: i32) -> (i32, i32) {
    %c0_i32 = arith.constant 0 : i32
    %c0_i32_0 = arith.constant 0 : i32
    %c0_i32_1 = arith.constant 0 : i32
    return %c0_i32, %c0_i32_0 : i32, i32
  }
  func.func @transform_4(%arg0: i32) -> i32 {
    %c0_i32 = arith.constant 0 : i32
    %c0_i32_0 = arith.constant 0 : i32
    return %c0_i32 : i32
  }
  func.func @transform_5(%arg0: i32) -> (i32, i32) {
    %c0_i32 = arith.constant 0 : i32
    %c0_i32_0 = arith.constant 0 : i32
    return %arg0, %c0_i32 : i32, i32
  }
  func.func @transform_6(%arg0: i32) -> (i32, i32) {
    %c0_i32 = arith.constant 0 : i32
    %c0_i32_0 = arith.constant 0 : i32
    return %arg0, %c0_i32 : i32, i32
  }
}

</mosaic_0001>

<bundles_post_ra>
// kernel: tpu_custom_call.1
= control target key start
LH: loop header
LB: loop body
LE: loop exit
PB: predicated region body
PF: predicated region fallthrough
CT: control target
= control target key end

     0   :  { %13 = vsyncpa [#allocation4], 0  ;;  %s531_s0 = inlined_call_operand.hbm [shape: f32[2,8,32], index: 0, kind: input, shape index: {}]   ;;  %s532_s1 = inlined_call_operand.hbm [shape: f32[32,32], index: 1, kind: input, shape index: {}]   ;;  %s533_s2 = inlined_call_operand.vmem [shape: f32[1,32], index: 2, kind: input, shape index: {}]   ;;  %s534_s3 = inlined_call_operand.vmem [shape: f32[1,32], index: 3, kind: input, shape index: {}]   ;;  %s535_s4 = inlined_call_operand.<no memory space> [shape: f32[1], index: 4, kind: input, shape index: {}]   ;;  %s536_s5 = inlined_call_operand.hbm [shape: f32[2,32], index: 5, kind: output, shape index: {0}]   ;;  %s537_s6 = inlined_call_operand.hbm [shape: f32[2,8], index: 6, kind: output, shape index: {1}]  }
   0x1   :  { %14 = vsyncpa [#allocation7], 0 }
   0x2   :  { %15 = vsyncpa [#allocation5], 0 }
   0x3   :  { %16 = vsyncpa [#allocation10], 0  ;;  %s447_s21 = smov [#allocation3]  }
   0x4   :  { %s22_s22 = sshll.u32 %s447_s21, 4  ;;  %s23_s22 = int_to_ptr.vmem [resolvable:$true] %s22_s22 }
   0x5   :  { %s367_s23 = scalar_lea.vmem %s23_s22, 256  ;;  %p372_p1 = scmp.lt.s32.totalorder %s23_s22, %s23_s22 }
   0x6   :  { %p368_p0 = scmp.ne.s32.totalorder %s23_s22, %s367_s23  ;;  %p373_p2 = scmp.lt.s32.totalorder %s367_s23, %s367_s23 }
   0x8   :  { %p374_p3 = por %p373_p2, %p372_p1 }
   0xa   :  { %p375_p4 = pnand %p374_p3, %p368_p0 }
   0xc   :  { %378 = shalt.err (!%p375_p4)
}
   0xd   :  { %s448_s24 = smov 128   ;;  %s449_s25 = smov 8  }
   0xe   :  { %28 = dma.hbm_to_vmem [thread:$0]  %s531_s0, 256, %s23_s22, [#allocation4], %s448_s24, %s448_s24, %s449_s25  }
   0xf   :  { %s450_s28 = smov [#allocation6]  }
  0x10   :  { %s34_s29 = sshll.u32 %s450_s28, 4  ;;  %s35_s29 = int_to_ptr.vmem [resolvable:$true] %s34_s29 }
  0x11   :  { %s387_s30 = scalar_lea.vmem %s35_s29, 512  ;;  %p392_p6 = scmp.lt.s32.totalorder %s35_s29, %s35_s29 }
  0x12   :  { %p388_p5 = scmp.ne.s32.totalorder %s35_s29, %s387_s30  ;;  %p393_p7 = scmp.lt.s32.totalorder %s387_s30, %s387_s30 }
  0x14   :  { %p394_p8 = por %p393_p7, %p392_p6 }
  0x16   :  { %p395_p9 = pnand %p394_p8, %p388_p5 }
  0x18   :  { %398 = shalt.err (!%p395_p9)
}
  0x19   :  { %40 = dma.hbm_to_vmem [thread:$0]  %s532_s1, 512, %s35_s29, [#allocation7], %s448_s24, %s448_s24, %s449_s25  }
  0x1a   :  { %439 = dma.done.wait [#allocation4], 256  }
  0x1b   :  { %440 = vsyncadd [#allocation4], 4294967040 }
  0x1c   :  { %441 = dma.done.wait [#allocation7], 512  }
  0x1d   :  { %442 = vsyncadd [#allocation7], 4294966784  ;;  %vm66_vm0 = vcmask 261120   ;;  %v58_v0 = vld [vmem:[#allocation6 + $0x18] sm:$0xff]  ;;  %v57_v1 = vld [vmem:[#allocation6 + $0x10] sm:$0xff]  ;;  %v173_v18 = vlaneseq  ;;  %v168_v21 = vstv %s535_s4  ;;  %vm183_vm1 = vcmask 1041409  }
  0x1e   :  { %325 = vmatprep.subr.mxu0 %v58_v0  ;;  %v53_v2 = vld [vmem:[#allocation3] sm:$0xff]  ;;  %v56_v3 = vld [vmem:[#allocation6 + $0x8] sm:$0xff]  ;;  %v55_v4 = vld [vmem:[#allocation6] sm:$0xff]  ;;  %vm186_vm2 = vcmask 58368   ;;  %v451_v31 = vmov 0  }
  0x1f   :  { %326 = vmatpush3.msra.mxu0 %v58_v0  ;;  %333 = vmatprep.mubr.msk.f32.mxu0 %vm66_vm0, %v53_v2  ;;  %v54_v5 = vld [vmem:[#allocation3 + $0x8] sm:$0xff]  ;;  %v315_v6 = vld [vmem:[%s533_s2] ss:$0 sm:$0xff]  ;;  %v174_v19 = vand.u32 127, %v173_v18  ;;  %v176_v20 = vshrl.u32 %v173_v18, 7 }
  0x20   :  { %327 = vmatprep.subr.mxu0 %v57_v1  ;;  %v318_v13 = vld [vmem:[%s534_s3] ss:$0 sm:$0xff]  ;;  %344 = vset.pattern.permute.xlu0 %v451_v31  ;;  %s452_s3 = smov [#allocation9]  }
  0x21   :  { %328 = vmatpush3.msra.mxu0 %v57_v1  ;;  %v508_v23 = vsub.s32 %v174_v19, %v176_v20  ;;  %343 = vset.pattern.permute.xlu1 %v451_v31  ;;  %v193_v32 = vsub.s32 0, %v176_v20  ;;  %v197_v33 = vsub.s32 1, %v176_v20  ;;  %s301_s4 = sshll.u32 %s452_s3, 4  ;;  %s302_s4 = int_to_ptr.vmem [resolvable:$true] %s301_s4 }
  0x22   :  { %329 = vmatprep.subr.mxu0 %v56_v3  ;;  %s399_s12 = scalar_lea.vmem %s302_s4, 32  ;;  %p404_p11 = scmp.lt.s32.totalorder %s302_s4, %s302_s4 }
  0x23   :  { %330 = vmatpush3.msra.mxu0 %v56_v3  ;;  %p400_p10 = scmp.ne.s32.totalorder %s302_s4, %s399_s12  ;;  %p405_p12 = scmp.lt.s32.totalorder %s399_s12, %s399_s12 }
  0x24   :  { %331 = vmatprep.subr.mxu0 %v55_v4 }
  0x25   :  { %332 = vmatpush3.msra.mxu0 %v55_v4  ;;  %p406_p13 = por %p405_p12, %p404_p11 }
  0x26   :  { %334 = vmatmul.mubr.msk.f32.vlgmr.msra.gmra.mxu0 %vm66_vm0, %v54_v5 }
  0x27   :  { %p407_p0 = pnand %p406_p13, %p400_p10 }
  0xe6   :  { %v335_v7 = vpop.f32.mrf.mxu0 }
  0xe7   :  { %v145_v8 = vadd.f32 %v335_v7, %v315_v6 }
  0xe8   :  { %v139_v9 = vpop.f32.mrf.mxu0 }
  0xe9   :  { %v140_v10 = vadd.f32 %v315_v6, %v139_v9  ;;  %345 = vtanh.f32 %v145_v8 }
  0xeb   :  { %347 = vtanh.f32 %v140_v10 }
  0xf6   :  { %v346_v11 = vpop.eup %345 }
  0xf7   :  { %v160_v16 = vmul.f32 %v346_v11, %v318_v13 }
  0xf8   :  { %v348_v12 = vpop.eup %347 }
  0xf9   :  { %v159_v14 = vmul.f32 %v348_v12, %v318_v13  ;;  %v164_v17 = vsel %vm66_vm0, %v160_v16, 0.0 }
  0xfb   :  { %v161_v15 = vsel %vm66_vm0, %v159_v14, 0.0 }
  0xfc   :  { %162 = vadd.xlane.f32.xlu0 %v161_v15 }
 0x100   :  { %165 = vadd.xlane.f32.xlu0 %v164_v17 }
 0x185   :  { %v163_v22 = vpop.xlane.xlu0 %162 }
 0x186   :  { %v169_v24 = vadd.f32 %v168_v21, %v163_v22 }
 0x188   :  { %v178_v27 = vrot.slane %v169_v24, %v508_v23 }
 0x189   :  { %v166_v25 = vpop.xlane.xlu0 %165 }
 0x18a   :  { %v170_v26 = vadd.f32 %v168_v21, %v166_v25 }
 0x18c   :  { %v182_v28 = vrot.slane %v170_v26, %v508_v23 }
 0x18e   :  { %v184_v29 = vsel %vm183_vm1, %v182_v28, %v178_v27 }
 0x18f   :  { %v187_v30 = vsel %vm186_vm2, %v184_v29, -inf }
 0x190   :  { %188 = vmax.xlane.f32.xlu1 %v187_v30 }
 0x219   :  { %v189_v34 = vpop.xlane.xlu1 %188 }
 0x21a   :  { %v194_v35 = vrot.slane %v189_v34, %v193_v32  ;;  %v198_v36 = vrot.slane %v189_v34, %v197_v33 }
 0x21c   :  { %v201_v37 = vsub.f32 %v169_v24, %v194_v35  ;;  %v202_v38 = vsub.f32 %v170_v26, %v198_v36 }
 0x21e   :  { %v203_v39 = vmul.f32 1.442695, %v201_v37  ;;  %v205_v40 = vmul.f32 1.442695, %v202_v38 }
 0x220   :  { %349 = vpow2.f32 %v203_v39 }
 0x221   :  { %351 = vpow2.f32 %v205_v40 }
 0x22d   :  { %v350_v41 = vpop.eup %349 }
 0x22e   :  { %v352_v42 = vpop.eup %351  ;;  %210 = vperm.xlu1 %343, %v350_v41  }
 0x22f   :  { %213 = vperm.xlu0 %344, %v352_v42  }
 0x2a9   :  { %v211_v43 = vpop.permute.xlu1 %210 }
 0x2aa   :  { %v214_v44 = vpop.permute.xlu0 %213  ;;  %v218_v45 = vrot.slane %v211_v43, %v508_v23 }
 0x2ab   :  { %v222_v46 = vrot.slane %v214_v44, %v508_v23 }
 0x2ad   :  { %v223_v47 = vsel %vm183_vm1, %v222_v46, %v218_v45 }
 0x2ae   :  { %v225_v48 = vsel %vm186_vm2, %v223_v47, 0.0 }
 0x2af   :  { %226 = vadd.xlane.f32.xlu1 %v225_v48 }
 0x338   :  { %v227_v49 = vpop.xlane.xlu1 %226 }
 0x339   :  { %353 = vrcp.f32 %v227_v49 }
 0x33a   :  { %355 = vtanh.f32 %v348_v12 }
 0x33b   :  { %357 = vtanh.f32 %v346_v11 }
 0x346   :  { %v354_v50 = vpop.eup %353 }
 0x347   :  { %v233_v51 = vrot.slane %v354_v50, %v193_v32  ;;  %v237_v53 = vrot.slane %v354_v50, %v197_v33  ;;  %v356_v55 = vpop.eup %355 }
 0x348   :  { %v358_v59 = vpop.eup %357 }
 0x349   :  { %v240_v52 = vmul.f32 %v350_v41, %v233_v51  ;;  %v241_v54 = vmul.f32 %v352_v42, %v237_v53 }
 0x34b   :  { %244 = vperm.xlu0 %344, %v240_v52  }
 0x34f   :  { %249 = vperm.xlu0 %344, %v241_v54  }
 0x3c6   :  { %v245_v56 = vpop.permute.xlu0 %244 }
 0x3c7   :  { %v252_v57 = vmul.f32 %v356_v55, %v245_v56  ;;  %v277_v62 = vrot.slane %v245_v56, %v508_v23 }
 0x3c9   :  { %v254_v58 = vsel %vm66_vm0, %v252_v57, 0.0 }
 0x3ca   :  { %v255_v60 = vrot.slane %v254_v58, 4  ;;  %v250_v61 = vpop.permute.xlu0 %249 }
 0x3cb   :  { %v253_v63 = vmul.f32 %v358_v59, %v250_v61  ;;  %v281_v0 = vrot.slane %v250_v61, %v508_v23 }
 0x3cc   :  { %v256_v1 = vadd.f32 %v255_v60, %v254_v58 }
 0x3cd   :  { %v261_v2 = vsel %vm66_vm0, %v253_v63, 0.0  ;;  %v282_v3 = vsel %vm183_vm1, %v281_v0, %v277_v62 }
 0x3ce   :  { %v257_v4 = vrot.slane %v256_v1, 2  ;;  %v262_v5 = vrot.slane %v261_v2, 4  ;;  %284 = vst.msk [vmem:[#allocation9] sm:$0x3] %vm186_vm2, %v282_v3 }
 0x3cf   :  { %410 = shalt.err (!%p407_p0)
}
 0x3d0   :  { %304 = dma.vmem_to_hbm [thread:$0]  %s302_s4, 32, %s537_s6, [#allocation10]   ;;  %v258_v6 = vadd.f32 %v257_v4, %v256_v1  ;;  %v263_v7 = vadd.f32 %v262_v5, %v261_v2  ;;  %vm272_vm3 = vcmask 254976  }
 0x3d1   :  { %s453_s15 = smov [#allocation8]  }
 0x3d2   :  { %v264_v8 = vrot.slane %v263_v7, 2  ;;  %v259_v9 = vrot.slane %v258_v6, 1  ;;  %s291_s16 = sshll.u32 %s453_s15, 4  ;;  %s292_s16 = int_to_ptr.vmem [resolvable:$true] %s291_s16 }
 0x3d3   :  { %s419_s17 = scalar_lea.vmem %s292_s16, 32  ;;  %p424_p2 = scmp.lt.s32.totalorder %s292_s16, %s292_s16 }
 0x3d4   :  { %v265_v10 = vadd.f32 %v264_v8, %v263_v7  ;;  %v260_v13 = vadd.f32 %v259_v9, %v258_v6  ;;  %p420_p1 = scmp.ne.s32.totalorder %s292_s16, %s419_s17  ;;  %p425_p3 = scmp.lt.s32.totalorder %s419_s17, %s419_s17 }
 0x3d6   :  { %v266_v11 = vrot.slane %v265_v10, 1  ;;  %p426_p4 = por %p425_p3, %p424_p2 }
 0x3d8   :  { %v267_v12 = vadd.f32 %v266_v11, %v265_v10  ;;  %p427_p5 = pnand %p426_p4, %p420_p1 }
 0x3da   :  { %v270_v14 = vsel %vm183_vm1, %v267_v12, %v260_v13 }
 0x3db   :  { %273 = vst.msk [vmem:[#allocation8] sm:$0x3] %vm272_vm3, %v270_v14 }
 0x3dc   :  { %430 = shalt.err (!%p427_p5)
}
 0x3dd   :  { %294 = dma.vmem_to_hbm [thread:$0]  %s292_s16, 32, %s536_s5, [#allocation5]  }
 0x3de   :  { %443 = dma.done.wait [#allocation5], 32  }
 0x3df   :  { %444 = vsyncadd [#allocation5], 4294967264 }
 0x3e0   :  { %445 = dma.done.wait [#allocation10], 32  }
 0x3e1   :  { %446 = vsyncadd [#allocation10], 4294967264 }
 0x3e2   :  { %311 = vsyncpa [#allocation4], 1 }
 0x3e3   :  { %312 = vsyncpa [#allocation7], 1 }
 0x3e4   :  { %313 = vsyncpa [#allocation5], 1 }
 0x3e5   :  { %314 = vsyncpa [#allocation10], 1 }

</bundles_post_ra>
